<compile_context>
chip_gen: v7x
topology: tpu7x:2x2x1
jax: 0.10.0
libtpu: 0.0.40
codegen_flags: <defaults>
</compile_context>

<pallas_src>
import jax
import jax.numpy as jnp
from jax.experimental import pallas as pl
from jax.experimental.pallas import tpu as pltpu


def _round_up(x, m):
    return (x + m - 1) // m * m


def mlp_kernel(x_ref, w1_ref, b1_ref, w2_ref, b2_ref, o_ref):
    """One batch tile: linear1 (bf16 MXU, f32 acc) -> sigmoid -> linear2 -> lane-dense store.

    x_ref : (TB, E)    bf16 (preferred) or f32 activation tile - the only per-tile HBM stream
    w1_ref: (E, E)     bf16 resident weight, (in, out) layout
    b1_ref: (1, E)     f32  resident bias row
    w2_ref: (1, E)     bf16 second-layer weight as a lane-dense row
    b2_ref: (1,)       f32  scalar bias in SMEM
    o_ref : (1, 1, TB) f32  lane-dense output tile (batch on the lane axis)
    """
    x = x_ref[...]
    if x.dtype != jnp.bfloat16:          # trace-time branch: cast only if the producer sent f32
        x = x.astype(jnp.bfloat16)
    acc = jnp.dot(x, w1_ref[...], preferred_element_type=jnp.float32)   # (TB, E) f32 accumulate
    # sigmoid(z) = 1 / (1 + exp(-z)): exp + approximate reciprocal both go to the EUP slot.
    h = pl.reciprocal(1.0 + jnp.exp(-(acc + b1_ref[...])), approx=True)  # (TB, E) f32
    # Second linear as (1,E) . (TB,E)^T -> (1,TB): avoids an N=1 MXU pass / lane-sparse weight,
    # and the result is already batch-on-lanes so the store is an unmasked lane-dense vst.
    # h is fed as bf16 (halves vreg traffic / any layout work for the contraction).
    r = jax.lax.dot_general(
        w2_ref[...], h.astype(jnp.bfloat16),
        dimension_numbers=(((1,), (1,)), ((), ())),
        preferred_element_type=jnp.float32)                              # (1, TB) f32
    o_ref[...] = (r + b2_ref[0])[None].astype(o_ref.dtype)               # (1, 1, TB)


def mlp_forward(hidden, w1, b1, w2, b2, *, block_b=1024):
    """hidden: (B, E) bf16 (preferred) or f32.  w1: (E, E) (in,out), b1: (E,),
    w2: (E, 1) or (E,), b2: (1,).  Returns rating with torch.squeeze semantics
    ((B,), scalar if B == 1)."""
    B, E = hidden.shape

    # Batch tile:
    #  - B < 128: one block == the full array (no 16x padded DMA/MXU work for tiny batches;
    #    the lane-masked output store is irrelevant at this size).
    #  - large B: >=128 (lane-dense store), large tile to amortize ~0.35us/step overhead,
    #    and at least 2 tiles when possible so both v7x TensorCores get work.
    if B < 128:
        tb = B
    else:
        tb = max(128, min(block_b, _round_up(pl.cdiv(B, 2), 128)))
    n_tiles = pl.cdiv(B, tb)

    # No cast / pad of `hidden` here (each would be a separate full-HBM XLA pass).
    # The ragged last block is handled by Pallas' masked boundary DMA; the garbage tail
    # rows are sliced off below and never feed a cross-batch reduction.
    w1b = w1 if w1.dtype == jnp.bfloat16 else w1.astype(jnp.bfloat16)
    b1r = b1.reshape(1, E).astype(jnp.float32)
    w2r = w2.reshape(1, E).astype(jnp.bfloat16)    # (E,1)/(E,) -> lane-dense (1,E) row
    b2s = b2.reshape(1).astype(jnp.float32)

    x_bytes = B * E * jnp.dtype(hidden.dtype).itemsize
    cost = pl.CostEstimate(
        flops=2 * B * E * E + 2 * B * E,
        transcendentals=B * E,
        bytes_accessed=x_bytes + E * E * 2 + E * 4 + E * 2 + 4 + n_tiles * tb * 4,
    )

    # VMEM per step (tb=1024, E=384): 2 x 0.75 MiB bf16 x buffers (1.5 MiB each if f32)
    # + 0.29 MiB resident bf16 W1 + tiny rows -> far below every generation's scoped
    # default, so no vmem_limit_bytes override is needed.
    out = pl.pallas_call(
        mlp_kernel,
        out_shape=jax.ShapeDtypeStruct((n_tiles, 1, tb), jnp.float32),
        grid=(n_tiles,),
        in_specs=[
            pl.BlockSpec((tb, E), lambda i: (i, 0)),            # x tile, pipelined HBM stream
            pl.BlockSpec((E, E), lambda i: (0, 0)),             # W1 bf16, VMEM-resident
            pl.BlockSpec((1, E), lambda i: (0, 0)),             # b1 row, resident
            pl.BlockSpec((1, E), lambda i: (0, 0)),             # W2 row, resident
            pl.BlockSpec(memory_space=pltpu.MemorySpace.SMEM),  # b2 scalar in SMEM
        ],
        out_specs=pl.BlockSpec((1, 1, tb), lambda i: (i, 0, 0)),
        compiler_params=pltpu.CompilerParams(
            dimension_semantics=("parallel",),   # batch tiles across TCs (v7x megacore)
        ),
        cost_estimate=cost,
    )(hidden, w1b, b1r, w2r, b2s)

    rating = out.reshape(n_tiles * tb)[:B]
    return jnp.squeeze(rating)   # torch.squeeze: drops all size-1 dims (B==1 -> scalar)


def init_mlp_params(key, emsize=384):
    """Matches MLP.init_weights(): U(-0.1, 0.1) weights, zero biases.
    W1 is stored pre-transposed (in, out) and in bf16."""
    initrange = 0.1
    k1, k2 = jax.random.split(key)
    w1 = jax.random.uniform(k1, (emsize, emsize), jnp.float32,
                            minval=-initrange, maxval=initrange).astype(jnp.bfloat16)
    b1 = jnp.zeros((emsize,), jnp.float32)
    w2 = jax.random.uniform(k2, (emsize, 1), jnp.float32,
                            minval=-initrange, maxval=initrange)
    b2 = jnp.zeros((1,), jnp.float32)
    return w1, b1, w2, b2


if __name__ == "__main__":
    emsize = 384
    key = jax.random.PRNGKey(0)
    k_in, k_par = jax.random.split(key)
    w1, b1, w2, b2 = init_mlp_params(k_par, emsize)
    w1f = w1.astype(jnp.float32)
    w2f = w2.astype(jnp.float32)

    # --- small-batch path (B=8): single block == full array, f32 producer ---
    batch = 8
    hidden = jax.random.normal(k_in, (batch, emsize), jnp.float32)
    rating = jax.block_until_ready(mlp_forward(hidden, w1, b1, w2, b2))
    ref = jnp.squeeze(jax.nn.sigmoid(hidden @ w1f + b1) @ w2f + b2)
    assert rating.shape == (batch,)
    assert jnp.allclose(rating, ref, atol=1e-2, rtol=1e-2), (
        float(jnp.max(jnp.abs(rating - ref))))

    # --- multi-tile path (B=300): bf16 producer, 2 parallel tiles, ragged last block ---
    batch2 = 300
    hidden2 = jax.random.normal(jax.random.PRNGKey(1), (batch2, emsize),
                                jnp.float32).astype(jnp.bfloat16)
    rating2 = jax.block_until_ready(mlp_forward(hidden2, w1, b1, w2, b2))
    ref2 = jnp.squeeze(
        jax.nn.sigmoid(hidden2.astype(jnp.float32) @ w1f + b1) @ w2f + b2)
    assert rating2.shape == (batch2,)
    assert jnp.allclose(rating2, ref2, atol=1e-2, rtol=1e-2), (
        float(jnp.max(jnp.abs(rating2 - ref2))))

    print("KERNEL_OK")
</pallas_src>

<mosaic_0001>
module attributes {stable_mosaic.version = 11 : i64} {
  func.func @mlp_kernel(%arg0: i32, %arg1: memref<8x384xf32, #tpu.memory_space<vmem>>, %arg2: memref<384x384xbf16, #tpu.memory_space<vmem>>, %arg3: memref<1x384xf32, #tpu.memory_space<vmem>>, %arg4: memref<1x384xbf16, #tpu.memory_space<vmem>>, %arg5: memref<1xf32, #tpu.memory_space<smem>>, %arg6: memref<1x1x8xf32, #tpu.memory_space<vmem>>) attributes {dimension_semantics = [#tpu.dimension_semantics<parallel>], iteration_bounds = array<i64: 1>, scalar_prefetch = 0 : i64, scratch_operands = 0 : i64, tpu.core_type = #tpu.core_type<tc>, window_params = [{transform_indices = @transform_0, window_bounds = array<i64: 8, 384>}, {pipeline_mode = #tpu.pipeline_mode<synchronous>, transform_indices = @transform_1, window_bounds = array<i64: 384, 384>}, {pipeline_mode = #tpu.pipeline_mode<synchronous>, transform_indices = @transform_2, window_bounds = array<i64: 1, 384>}, {pipeline_mode = #tpu.pipeline_mode<synchronous>, transform_indices = @transform_3, window_bounds = array<i64: 1, 384>}, {transform_indices = @transform_4, window_bounds = array<i64: 1>}, {transform_indices = @transform_5, window_bounds = array<i64: 1, 1, 8>}]} {
    %c0 = arith.constant 0 : index
    %c0_0 = arith.constant 0 : index
    %0 = vector.load %arg1[%c0, %c0_0] : memref<8x384xf32, #tpu.memory_space<vmem>>, vector<8x384xf32>
    %1 = arith.truncf %0 : vector<8x384xf32> to vector<8x384xbf16>
    %c0_1 = arith.constant 0 : index
    %c0_2 = arith.constant 0 : index
    %2 = vector.load %arg2[%c0_1, %c0_2] : memref<384x384xbf16, #tpu.memory_space<vmem>>, vector<384x384xbf16>
    %cst = arith.constant dense<0.000000e+00> : vector<8x384xf32>
    %3 = tpu.matmul %1, %2, %cst {dimension_numbers = #tpu.dot_dimension_numbers<[1], [0], [0], [1], [0, 0, 1, 1], [], []>} : vector<8x384xbf16>, vector<384x384xbf16>, vector<8x384xf32> -> vector<8x384xf32>
    %c0_3 = arith.constant 0 : index
    %c0_4 = arith.constant 0 : index
    %4 = vector.load %arg3[%c0_3, %c0_4] : memref<1x384xf32, #tpu.memory_space<vmem>>, vector<1x384xf32>
    %5 = vector.broadcast %4 : vector<1x384xf32> to vector<8x384xf32>
    %6 = arith.addf %3, %5 : vector<8x384xf32>
    %cst_5 = arith.constant 0.000000e+00 : f32
    %7 = vector.broadcast %cst_5 : f32 to vector<8x384xf32>
    %8 = arith.subf %7, %6 : vector<8x384xf32>
    %9 = math.exp %8 : vector<8x384xf32>
    %cst_6 = arith.constant 1.000000e+00 : f32
    %10 = vector.broadcast %cst_6 : f32 to vector<8x384xf32>
    %11 = arith.addf %10, %9 : vector<8x384xf32>
    %12 = tpu.reciprocal %11 {approx = true} : vector<8x384xf32> -> vector<8x384xf32>
    %c0_7 = arith.constant 0 : index
    %c0_8 = arith.constant 0 : index
    %13 = vector.load %arg4[%c0_7, %c0_8] : memref<1x384xbf16, #tpu.memory_space<vmem>>, vector<1x384xbf16>
    %14 = arith.truncf %12 : vector<8x384xf32> to vector<8x384xbf16>
    %cst_9 = arith.constant dense<0.000000e+00> : vector<1x8xf32>
    %15 = tpu.matmul %13, %14, %cst_9 {dimension_numbers = #tpu.dot_dimension_numbers<[1], [1], [0], [0], [0, 0, 1, 0], [], []>} : vector<1x384xbf16>, vector<8x384xbf16>, vector<1x8xf32> -> vector<1x8xf32>
    %c0_10 = arith.constant 0 : index
    %16 = memref.load %arg5[%c0_10] : memref<1xf32, #tpu.memory_space<smem>>
    %17 = vector.broadcast %16 : f32 to vector<1x8xf32>
    %18 = arith.addf %15, %17 : vector<1x8xf32>
    %19 = vector.shape_cast %18 : vector<1x8xf32> to vector<1x1x8xf32>
    %c0_11 = arith.constant 0 : index
    %c0_12 = arith.constant 0 : index
    %c0_13 = arith.constant 0 : index
    %20 = vector.load %arg6[%c0_11, %c0_12, %c0_13] : memref<1x1x8xf32, #tpu.memory_space<vmem>>, vector<1x1x8xf32>
    tpu.vector_store %arg6[%c0_11, %c0_12, %c0_13], %19 {strides = array<i32>} : memref<1x1x8xf32, #tpu.memory_space<vmem>>, vector<1x1x8xf32>,
    return
  }
  func.func @transform_0(%arg0: i32) -> (i32, i32) {
    %c0_i32 = arith.constant 0 : i32
    %c0_i32_0 = arith.constant 0 : i32
    return %arg0, %c0_i32 : i32, i32
  }
  func.func @transform_1(%arg0: i32) -> (i32, i32) {
    %c0_i32 = arith.constant 0 : i32
    %c0_i32_0 = arith.constant 0 : i32
    %c0_i32_1 = arith.constant 0 : i32
    return %c0_i32, %c0_i32_0 : i32, i32
  }
  func.func @transform_2(%arg0: i32) -> (i32, i32) {
    %c0_i32 = arith.constant 0 : i32
    %c0_i32_0 = arith.constant 0 : i32
    %c0_i32_1 = arith.constant 0 : i32
    return %c0_i32, %c0_i32_0 : i32, i32
  }
  func.func @transform_3(%arg0: i32) -> (i32, i32) {
    %c0_i32 = arith.constant 0 : i32
    %c0_i32_0 = arith.constant 0 : i32
    %c0_i32_1 = arith.constant 0 : i32
    return %c0_i32, %c0_i32_0 : i32, i32
  }
  func.func @transform_4(%arg0: i32) -> i32 {
    %c0_i32 = arith.constant 0 : i32
    %c0_i32_0 = arith.constant 0 : i32
    return %c0_i32 : i32
  }
  func.func @transform_5(%arg0: i32) -> (i32, i32, i32) {
    %c0_i32 = arith.constant 0 : i32
    %c0_i32_0 = arith.constant 0 : i32
    %c0_i32_1 = arith.constant 0 : i32
    return %arg0, %c0_i32, %c0_i32_0 : i32, i32, i32
  }
}

</mosaic_0001>

<bundles_post_ra>
// kernel: tpu_custom_call.1
= control target key start
LH: loop header
LB: loop body
LE: loop exit
PB: predicated region body
PF: predicated region fallthrough
CT: control target
= control target key end

     0   :  { %11 = vsyncpa [#allocation4], 0  ;;  %s1296_s0 = inlined_call_operand.hbm [shape: f32[8,384], index: 0, kind: input, shape index: {}]   ;;  %s1297_s1 = inlined_call_operand.hbm [shape: bf16[384,384], index: 1, kind: input, shape index: {}]   ;;  %s1298_s2 = inlined_call_operand.vmem [shape: f32[1,384], index: 2, kind: input, shape index: {}]   ;;  %s1299_s3 = inlined_call_operand.vmem [shape: bf16[1,384], index: 3, kind: input, shape index: {}]   ;;  %s1300_s4 = inlined_call_operand.<no memory space> [shape: f32[1], index: 4, kind: input, shape index: {}]   ;;  %s1301_s5 = inlined_call_operand.hbm [shape: f32[1,1,8], index: 5, kind: output, shape index: {}]  }
   0x1   :  { %12 = vsyncpa [#allocation7], 0 }
   0x2   :  { %13 = vsyncpa [#allocation5], 0  ;;  %s1192_s18 = smov [#allocation3]   ;;  %s1193_s20 = smov [#allocation6]  }
   0x3   :  { %s20_s19 = sshll.u32 %s1192_s18, 4  ;;  %s29_s21 = sshll.u32 %s1193_s20, 4  ;;  %s21_s19 = int_to_ptr.vmem [resolvable:$true] %s20_s19  ;;  %s1231_s21 = int_to_ptr.vmem [resolvable:$true] %s29_s21 }
   0x4   :  { %s1120_s24 = scalar_lea.hbm %s1296_s0, 384 }
   0x5   :  { %p1121_p0 = scmp.ne.s32.totalorder %s1296_s0, %s1120_s24  ;;  %p1124_p1 = scmp.lt.u32.totalorder %s1120_s24, %s1296_s0 }
   0x7   :  { %p1126_p2 = pnand %p1124_p1, %p1121_p0 }
   0x9   :  { %1129 = shalt.err (!%p1126_p2)
}
   0xa   :  { %s1130_s29 = scalar_lea.vmem %s21_s19, 384  ;;  %p1135_p4 = scmp.lt.s32.totalorder %s21_s19, %s21_s19 }
   0xb   :  { %p1131_p3 = scmp.ne.s32.totalorder %s21_s19, %s1130_s29  ;;  %p1136_p5 = scmp.lt.s32.totalorder %s1130_s29, %s1130_s29 }
   0xd   :  { %p1137_p6 = por %p1136_p5, %p1135_p4 }
   0xf   :  { %p1138_p7 = pnand %p1137_p6, %p1131_p3 }
  0x11   :  { %1141 = shalt.err (!%p1138_p7)
}
  0x12   :  { %23 = dma.hbm_to_vmem [thread:$0]  %s1296_s0, 384, %s21_s19, [#allocation4]  }
  0x13   :  { %s1142_s9 = scalar_lea.hbm %s1297_s1, 9216 }
  0x14   :  { %p1143_p8 = scmp.ne.s32.totalorder %s1297_s1, %s1142_s9  ;;  %p1146_p9 = scmp.lt.u32.totalorder %s1142_s9, %s1297_s1 }
  0x16   :  { %p1148_p10 = pnand %p1146_p9, %p1143_p8 }
  0x18   :  { %1151 = shalt.err (!%p1148_p10)
}
  0x19   :  { %s1152_s14 = scalar_lea.vmem %s1231_s21, 9216  ;;  %p1157_p12 = scmp.lt.s32.totalorder %s1231_s21, %s1231_s21 }
  0x1a   :  { %p1153_p11 = scmp.ne.s32.totalorder %s1231_s21, %s1152_s14  ;;  %p1158_p13 = scmp.lt.s32.totalorder %s1152_s14, %s1152_s14 }
  0x1c   :  { %p1159_p0 = por %p1158_p13, %p1157_p12 }
  0x1e   :  { %p1160_p1 = pnand %p1159_p0, %p1153_p11 }
  0x20   :  { %1163 = shalt.err (!%p1160_p1)
}
  0x21   :  { %s1194_s0 = smov 192   ;;  %s1195_s15 = smov 12  }
  0x22   :  { %35 = dma.hbm_to_vmem [thread:$0]  %s1297_s1, 9216, %s1231_s21, [#allocation7], %s1194_s0, %s1194_s0, %s1195_s15  }
  0x23   :  { %1186 = dma.done.wait [#allocation4], 384  }
  0x24   :  { %1187 = vsyncadd [#allocation4], 4294966912 }
  0x25   :  { %1188 = dma.done.wait [#allocation7], 9216  }
  0x26   :  { %1189 = vsyncadd [#allocation7], 4294958080  ;;  %v1012_v0 = vld [vmem:[#allocation6 + $0x4] ss:$12 sps:$4 sm:$0xff]   ;;  %v1014_v1 = vld [vmem:[#allocation6] ss:$12 sps:$4 sm:$0xff]  }
  0x27   :  { %552 = vmatprep.subr.bf16.mxu0 %v1012_v0  ;;  %v1015_v2 = vld [vmem:[#allocation6 + $0x1c] ss:$12 sps:$4 sm:$0xff]   ;;  %v1017_v3 = vld [vmem:[#allocation6 + $0x18] ss:$12 sps:$4 sm:$0xff]   ;;  %v1018_v4 = vld [vmem:[#allocation6 + $0x34] ss:$12 sps:$4 sm:$0xff]  }
  0x28   :  { %553 = vmatpush1.bf16.msra.mxu0 %v1014_v1  ;;  %v1024_v5 = vld [vmem:[#allocation6 + $0xc8] ss:$12 sps:$4 sm:$0xff]   ;;  %v1020_v6 = vld [vmem:[#allocation6 + $0x30] ss:$12 sps:$4 sm:$0xff]   ;;  %v1021_v7 = vld [vmem:[#allocation6 + $0x4c] ss:$12 sps:$4 sm:$0xff]  }
  0x29   :  { %554 = vmatprep.subr.bf16.mxu0 %v1015_v2  ;;  %933 = vmatprep.subr.bf16.mxu1 %v1024_v5  ;;  %v1027_v8 = vld [vmem:[#allocation6 + $0x8] ss:$12 sps:$4 sm:$0xff]   ;;  %v1029_v9 = vld [vmem:[#allocation6 + $0xe0] ss:$12 sps:$4 sm:$0xff]   ;;  %v1025_v11 = vld [vmem:[#allocation6 + $0x64] ss:$12 sps:$4 sm:$0xff]  }
  0x2a   :  { %v1023_v10 = vld [vmem:[#allocation6 + $0x48] ss:$12 sps:$4 sm:$0xff]   ;;  %934 = vmatpush3.bf16.msra.mxu1 %v1027_v8  ;;  %v1032_v12 = vld [vmem:[#allocation6 + $0x20] ss:$12 sps:$4 sm:$0xff]   ;;  %v1034_v13 = vld [vmem:[#allocation6 + $0xf8] ss:$12 sps:$4 sm:$0xff]  }
  0x2b   :  { %935 = vmatprep.subr.bf16.mxu1 %v1029_v9  ;;  %v1028_v14 = vld [vmem:[#allocation6 + $0x60] ss:$12 sps:$4 sm:$0xff]   ;;  %v1037_v15 = vld [vmem:[#allocation6 + $0x38] ss:$12 sps:$4 sm:$0xff]   ;;  %v1030_v16 = vld [vmem:[#allocation6 + $0x7c] ss:$12 sps:$4 sm:$0xff]  }
  0x2c   :  { %555 = vmatpush1.bf16.msra.mxu0 %v1017_v3  ;;  %v1039_v17 = vld [vmem:[#allocation6 + $0x110] ss:$12 sps:$4 sm:$0xff]   ;;  %v1033_v18 = vld [vmem:[#allocation6 + $0x78] ss:$12 sps:$4 sm:$0xff]   ;;  %v1044_v20 = vld [vmem:[#allocation6 + $0x128] ss:$12 sps:$4 sm:$0xff]  }
  0x2d   :  { %556 = vmatprep.subr.bf16.mxu0 %v1018_v4  ;;  %v1042_v19 = vld [vmem:[#allocation6 + $0x50] ss:$12 sps:$4 sm:$0xff]   ;;  %v1035_v21 = vld [vmem:[#allocation6 + $0x94] ss:$12 sps:$4 sm:$0xff]   ;;  %v1040_v25 = vld [vmem:[#allocation6 + $0xac] ss:$12 sps:$4 sm:$0xff]  }
  0x2e   :  { %936 = vmatpush3.bf16.msra.mxu1 %v1032_v12  ;;  %v1038_v22 = vld [vmem:[#allocation6 + $0x90] ss:$12 sps:$4 sm:$0xff]   ;;  %v1047_v23 = vld [vmem:[#allocation6 + $0x68] ss:$12 sps:$4 sm:$0xff]   ;;  %v1049_v24 = vld [vmem:[#allocation6 + $0x140] ss:$12 sps:$4 sm:$0xff]  }
  0x2f   :  { %937 = vmatprep.subr.bf16.mxu1 %v1034_v13  ;;  %v1043_v26 = vld [vmem:[#allocation6 + $0xa8] ss:$12 sps:$4 sm:$0xff]   ;;  %v1052_v27 = vld [vmem:[#allocation6 + $0x80] ss:$12 sps:$4 sm:$0xff]   ;;  %v1054_v28 = vld [vmem:[#allocation6 + $0x158] ss:$12 sps:$4 sm:$0xff]  }
  0x30   :  { %557 = vmatpush1.bf16.msra.mxu0 %v1020_v6  ;;  %v1045_v29 = vld [vmem:[#allocation6 + $0xc4] ss:$12 sps:$4 sm:$0xff]   ;;  %v1048_v30 = vld [vmem:[#allocation6 + $0xc0] ss:$12 sps:$4 sm:$0xff]   ;;  %v1050_v32 = vld [vmem:[#allocation6 + $0xdc] ss:$12 sps:$4 sm:$0xff]  }
  0x31   :  { %558 = vmatprep.subr.bf16.mxu0 %v1021_v7  ;;  %v1057_v31 = vld [vmem:[#allocation6 + $0x98] ss:$12 sps:$4 sm:$0xff]   ;;  %v1059_v33 = vld [vmem:[#allocation6 + $0x170] ss:$12 sps:$4 sm:$0xff]   ;;  %v49_v37 = vld [vmem:[#allocation3] sm:$0xff]  ;;  %v1196_v43 = vmov 0.0  }
  0x32   :  { %938 = vmatpush3.bf16.msra.mxu1 %v1037_v15  ;;  %v50_v34 = vld [vmem:[#allocation3 + $0x8] sm:$0xff]  ;;  %v1053_v38 = vld [vmem:[#allocation6 + $0xd8] ss:$12 sps:$4 sm:$0xff]   ;;  %v52_v40 = vpack.c.bf16 %v49_v37, %v49_v37  ;;  %v1070_v45 = vld [vmem:[#allocation6 + $0x1a0] ss:$12 sps:$4 sm:$0xff]   ;;  %vm1197_vm0 = vmmov 0  }
  0x33   :  { %939 = vmatprep.subr.bf16.mxu1 %v1039_v17  ;;  %v53_v35 = vpack.c.bf16 %v50_v34, %v50_v34  ;;  %v1062_v36 = vld [vmem:[#allocation6 + $0xb0] ss:$12 sps:$4 sm:$0xff]   ;;  %v1055_v39 = vld [vmem:[#allocation6 + $0xf4] ss:$12 sps:$4 sm:$0xff]   ;;  %v1060_v44 = vld [vmem:[#allocation6 + $0x10c] ss:$12 sps:$4 sm:$0xff]  }
  0x34   :  { %559 = vmatpush1.bf16.msra.mxu0 %v1023_v10  ;;  %v1066_v41 = vld [vmem:[#allocation6 + $0x188] ss:$12 sps:$4 sm:$0xff]   ;;  %v1058_v42 = vld [vmem:[#allocation6 + $0xf0] ss:$12 sps:$4 sm:$0xff]   ;;  %v1074_v48 = vld [vmem:[#allocation6 + $0x1b8] ss:$12 sps:$4 sm:$0xff]  }
  0x35   :  { %560 = vmatprep.subr.bf16.mxu0 %v1025_v11  ;;  %666 = vmatprep.mubr.bf16.mxu1 %v53_v35  ;;  %v1063_v46 = vld [vmem:[#allocation6 + $0x108] ss:$12 sps:$4 sm:$0xff]   ;;  %v1064_v47 = vld [vmem:[#allocation6 + $0x124] ss:$12 sps:$4 sm:$0xff]   ;;  %v1067_v49 = vld [vmem:[#allocation6 + $0x120] ss:$12 sps:$4 sm:$0xff]  }
  0x36   :  { %940 = vmatpush3.bf16.msra.mxu1 %v1042_v19  ;;  %584 = vmatprep.mubr.bf16.mxu0 %v53_v35  ;;  %v1068_v50 = vld [vmem:[#allocation6 + $0x13c] ss:$12 sps:$4 sm:$0xff]   ;;  %v1071_v52 = vld [vmem:[#allocation6 + $0x138] ss:$12 sps:$4 sm:$0xff]   ;;  %v1072_v53 = vld [vmem:[#allocation6 + $0x154] ss:$12 sps:$4 sm:$0xff]  }
  0x37   :  { %941 = vmatprep.subr.bf16.mxu1 %v1044_v20  ;;  %v1078_v51 = vld [vmem:[#allocation6 + $0x1d0] ss:$12 sps:$4 sm:$0xff]   ;;  %v1083_v54 = vld [vmem:[#allocation6 + $0x1e8] ss:$12 sps:$4 sm:$0xff]   ;;  %v1076_v56 = vld [vmem:[#allocation6 + $0x16c] ss:$12 sps:$4 sm:$0xff]  }
  0x38   :  { %561 = vmatpush1.bf16.msra.mxu0 %v1028_v14  ;;  %v1075_v55 = vld [vmem:[#allocation6 + $0x150] ss:$12 sps:$4 sm:$0xff]   ;;  %v1087_v57 = vld [vmem:[#allocation6 + $0x200] ss:$12 sps:$4 sm:$0xff]   ;;  %v1079_v58 = vld [vmem:[#allocation6 + $0x168] ss:$12 sps:$4 sm:$0xff]  }
  0x39   :  { %562 = vmatprep.subr.bf16.mxu0 %v1030_v16  ;;  %v1082_v59 = vld [vmem:[#allocation6 + $0x184] ss:$12 sps:$4 sm:$0xff]   ;;  %v1080_v61 = vld [vmem:[#allocation6 + $0x180] ss:$12 sps:$4 sm:$0xff]   ;;  %v1086_v62 = vld [vmem:[#allocation6 + $0x19c] ss:$12 sps:$4 sm:$0xff]   ;;  %v153_v16 = vlaneseq }
  0x3a   :  { %942 = vmatpush3.bf16.msra.mxu1 %v1047_v23  ;;  %v1091_v60 = vld [vmem:[#allocation6 + $0x218] ss:$12 sps:$4 sm:$0xff]   ;;  %v1095_v63 = vld [vmem:[#allocation6 + $0x230] ss:$12 sps:$4 sm:$0xff]   ;;  %v1090_v2 = vld [vmem:[#allocation6 + $0x1b4] ss:$12 sps:$4 sm:$0xff]  }
  0x3b   :  { %943 = vmatprep.subr.bf16.mxu1 %v1049_v24  ;;  %v51_v0 = vld [vmem:[#allocation3 + $0x10] sm:$0xff]  ;;  %v1198_v3 = vmov 0   ;;  %v1092_v7 = vld [vmem:[#allocation6 + $0x1c8] ss:$12 sps:$4 sm:$0xff]   ;;  %v1098_v8 = vld [vmem:[#allocation6 + $0x1e4] ss:$12 sps:$4 sm:$0xff]  }
  0x3c   :  { %563 = vmatpush1.bf16.msra.mxu0 %v1033_v18  ;;  %v1084_v1 = vld [vmem:[#allocation6 + $0x198] ss:$12 sps:$4 sm:$0xff]   ;;  %v54_v4 = vpack.c.bf16 %v51_v0, %v51_v0  ;;  %v1088_v5 = vld [vmem:[#allocation6 + $0x1b0] ss:$12 sps:$4 sm:$0xff]   ;;  %v1096_v9 = vld [vmem:[#allocation6 + $0x1e0] ss:$12 sps:$4 sm:$0xff]  }
  0x3d   :  { %564 = vmatprep.subr.bf16.mxu0 %v1035_v21  ;;  %v1094_v6 = vld [vmem:[#allocation6 + $0x1cc] ss:$12 sps:$4 sm:$0xff]   ;;  %v1101_v10 = vld [vmem:[#allocation6 + $0x1fc] ss:$12 sps:$4 sm:$0xff]   ;;  %v1104_v12 = vld [vmem:[#allocation6 + $0x214] ss:$12 sps:$4 sm:$0xff]  }
  0x3e   :  { %944 = vmatpush3.bf16.msra.mxu1 %v1052_v27  ;;  %v1099_v11 = vld [vmem:[#allocation6 + $0x1f8] ss:$12 sps:$4 sm:$0xff]   ;;  %v1102_v13 = vld [vmem:[#allocation6 + $0x210] ss:$12 sps:$4 sm:$0xff]   ;;  %v1105_v15 = vld [vmem:[#allocation6 + $0x228] ss:$12 sps:$4 sm:$0xff]  }
  0x3f   :  { %945 = vmatprep.subr.bf16.mxu1 %v1054_v28  ;;  %v1107_v14 = vld [vmem:[#allocation6 + $0x22c] ss:$12 sps:$4 sm:$0xff]   ;;  %v1199_v17 = vmov 1966171168   ;;  %v154_v19 = vshrl.u32 %v153_v16, 7  ;;  %s1200_s21 = smov [#allocation8]  }
  0x40   :  { %565 = vmatpush1.bf16.msra.mxu0 %v1038_v22  ;;  %v745_v18 = vunpack.c.l.s4 %v1199_v17  ;;  %v932_v20 = vld.sshfl [vmem:[%s1299_s3] sm:$0x13 pattern:$0x75316420]  ;;  %s850_s22 = sshll.u32 %s1200_s21, 4  ;;  %vm842_vm1 = vcmask 57344   ;;  %s851_s22 = int_to_ptr.vmem [resolvable:$true] %s850_s22 }
  0x41   :  { %566 = vmatprep.subr.bf16.mxu0 %v1040_v25  ;;  %v743_v22 = vcombine.high %v932_v20, %v932_v20  ;;  %s1164_s23 = scalar_lea.vmem %s851_s22, 16  ;;  %s1168_s24 = scalar_lea.vmem %s851_s22, 32 }
  0x42   :  { %946 = vmatpush3.bf16.msra.mxu1 %v1057_v31  ;;  %v746_v21 = vunpack.c.0.s8 %v745_v18  ;;  %v163_v31 = vsub.s32 2, %v154_v19  ;;  %p1165_p2 = scmp.ne.s32.totalorder %s851_s22, %s1164_s23  ;;  %p1169_p3 = scmp.lt.s32.totalorder %s851_s22, %s851_s22 }
  0x43   :  { %947 = vmatprep.subr.bf16.mxu1 %v1059_v33  ;;  %p1170_p4 = scmp.lt.s32.totalorder %s1168_s24, %s1164_s23 }
  0x44   :  { %567 = vmatpush1.bf16.msra.mxu0 %v1043_v26  ;;  %v749_v23 = vsub.s32 %v746_v21, %v154_v19 }
  0x45   :  { %568 = vmatprep.subr.bf16.mxu0 %v1045_v29  ;;  %p1171_p5 = por %p1170_p4, %p1169_p3 }
  0x46   :  { %948 = vmatpush3.bf16.msra.mxu1 %v1062_v36  ;;  %v757_v24 = vrot.slane %v743_v22, %v749_v23  ;;  %v750_v25 = vrot.slane %v932_v20, %v749_v23 }
  0x47   :  { %966 = vmatprep.subr.bf16.mxu1 %v1196_v43  ;;  %p1172_p6 = pnand %p1171_p5, %p1165_p2 }
  0x48   :  { %569 = vmatpush1.bf16.msra.mxu0 %v1048_v30 }
  0x49   :  { %570 = vmatprep.subr.bf16.mxu0 %v1050_v32  ;;  %667 = vmatmul.mubr.bf16.vlgmr.msra.gmra.mrb[0].mxu1 %v52_v40  ;;  %v151_v32 = vld [vmem:[%s1298_s2] sm:$0x7] }
  0x4a   :  { %967 = vmatpush3.bf16.msra.mxu1 %v1066_v41  ;;  %982 = vmatprep.mubr.msk.bf16.mxu1 %vm1197_vm0, %v1196_v43  ;;  %v164_v33 = vrot.slane %v151_v32, %v163_v31  ;;  %v159_v41 = vsub.s32 1, %v154_v19 }
  0x4b   :  { %968 = vmatprep.subr.bf16.mxu1 %v1196_v43 }
  0x4c   :  { %571 = vmatpush1.bf16.msra.mxu0 %v1053_v38 }
  0x4d   :  { %572 = vmatprep.subr.bf16.mxu0 %v1055_v39 }
  0x4e   :  { %969 = vmatpush3.bf16.msra.mxu1 %v1070_v45 }
  0x4f   :  { %970 = vmatprep.subr.bf16.mxu1 %v1196_v43 }
  0x50   :  { %573 = vmatpush1.bf16.msra.mxu0 %v1058_v42 }
  0x51   :  { %574 = vmatprep.subr.bf16.mxu0 %v1060_v44  ;;  %v160_v44 = vrot.slane %v151_v32, %v159_v41 }
  0x52   :  { %971 = vmatpush3.bf16.msra.mxu1 %v1074_v48 }
  0x53   :  { %972 = vmatprep.subr.bf16.mxu1 %v1196_v43 }
  0x54   :  { %575 = vmatpush1.bf16.msra.mxu0 %v1063_v46 }
  0x55   :  { %576 = vmatprep.subr.bf16.mxu0 %v1064_v47 }
  0x56   :  { %973 = vmatpush3.bf16.msra.mxu1 %v1078_v51 }
  0x57   :  { %974 = vmatprep.subr.bf16.mxu1 %v1196_v43 }
  0x58   :  { %577 = vmatpush1.bf16.msra.mxu0 %v1067_v49 }
  0x59   :  { %578 = vmatprep.subr.bf16.mxu0 %v1068_v50 }
  0x5a   :  { %975 = vmatpush3.bf16.msra.mxu1 %v1083_v54 }
  0x5b   :  { %976 = vmatprep.subr.bf16.mxu1 %v1196_v43 }
  0x5c   :  { %579 = vmatpush1.bf16.msra.mxu0 %v1071_v52 }
  0x5d   :  { %580 = vmatprep.subr.bf16.mxu0 %v1072_v53 }
  0x5e   :  { %977 = vmatpush3.bf16.msra.mxu1 %v1087_v57 }
  0x5f   :  { %978 = vmatprep.subr.bf16.mxu1 %v1196_v43 }
  0x60   :  { %581 = vmatpush1.bf16.msra.mxu0 %v1075_v55 }
  0x61   :  { %582 = vmatprep.subr.bf16.mxu0 %v1076_v56 }
  0x62   :  { %979 = vmatpush3.bf16.msra.mxu1 %v1091_v60 }
  0x63   :  { %980 = vmatprep.subr.bf16.mxu1 %v1196_v43 }
  0x64   :  { %583 = vmatpush1.bf16.msra.mxu0 %v1079_v58 }
  0x65   :  { %593 = vmatprep.subr.bf16.mxu0 %v1082_v59 }
  0x66   :  { %981 = vmatpush3.bf16.msra.mxu1 %v1095_v63 }
  0x67   :  { %585 = vmatmul.mubr.bf16.vlgmr.msra.gmra.mrb[0].mxu0 %v52_v40  ;;  %v155_v40 = vsub.s32 0, %v154_v19 }
  0x68   :  { %594 = vmatpush1.bf16.msra.mxu0 %v1080_v61  ;;  %625 = vmatprep.mubr.bf16.mxu0 %v1198_v3 }
  0x69   :  { %595 = vmatprep.subr.bf16.mxu0 %v1086_v62  ;;  %983 = vmatmul.mubr.bf16.vlgmr.msra.gmra.mrb[4].mxu1 %v54_v4  ;;  %v156_v42 = vrot.slane %v151_v32, %v155_v40 }
  0x6a   :  { %794 = vmatprep.mubr.bf16.mxu1 %v757_v24 }
  0x6c   :  { %596 = vmatpush1.bf16.msra.mxu0 %v1084_v1 }
  0x6d   :  { %597 = vmatprep.subr.bf16.mxu0 %v1090_v2 }
  0x70   :  { %598 = vmatpush1.bf16.msra.mxu0 %v1088_v5  ;;  %v758_v5 = vcombine.high %v750_v25, %v750_v25 }
  0x71   :  { %599 = vmatprep.subr.bf16.mxu0 %v1094_v6  ;;  %v734_v6 = vstv %s1300_s4 }
  0x74   :  { %600 = vmatpush1.bf16.msra.mxu0 %v1092_v7 }
  0x75   :  { %601 = vmatprep.subr.bf16.mxu0 %v1098_v8 }
  0x78   :  { %602 = vmatpush1.bf16.msra.mxu0 %v1096_v9 }
  0x79   :  { %603 = vmatprep.subr.bf16.mxu0 %v1101_v10 }
  0x7c   :  { %604 = vmatpush1.bf16.msra.mxu0 %v1099_v11 }
  0x7d   :  { %605 = vmatprep.subr.bf16.mxu0 %v1104_v12 }
  0x80   :  { %606 = vmatpush1.bf16.msra.mxu0 %v1102_v13 }
  0x81   :  { %607 = vmatprep.subr.bf16.mxu0 %v1107_v14 }
  0x84   :  { %608 = vmatpush1.bf16.msra.mxu0 %v1105_v15 }
  0x87   :  { %626 = vmatmul.mubr.bf16.vlgmr.msra.gmra.mrb[0].mxu0 %v54_v4 }
 0x11c   :  { %v949_v26 = vpop.f32.mrb[0].mxu1 }
 0x11d   :  { %v950_v27 = vpop.f32.mrb[1].mxu1 }
 0x11e   :  { %v951_v28 = vadd.f32 %v950_v27, %v949_v26  ;;  %v952_v29 = vpop.f32.mrb[2].mxu1 }
 0x11f   :  { %v953_v30 = vpop.f32.mrb[3].mxu1 }
 0x120   :  { %v669_v34 = vadd.f32 %v951_v28, %v164_v33 }
 0x13c   :  { %v708_v35 = vpop.f32.mrb[4].mxu1 }
 0x13d   :  { %v709_v36 = vadd.f32 %v708_v35, %v669_v34  ;;  %v984_v37 = vpop.f32.mrb[5].mxu1 }
 0x13e   :  { %v711_v38 = vpop.f32.mrb[6].mxu1 }
 0x13f   :  { %v985_v39 = vpop.f32.mrb[7].mxu1  ;;  %v716_v50 = vsub.f32 0.0, %v709_v36 }
 0x141   :  { %v721_v56 = vmul.f32 1.442695, %v716_v50 }
 0x15a   :  { %v627_v45 = vpop.f32.mrb[0].mxu0 }
 0x15b   :  { %v992_v46 = vadd.f32 %v627_v45, %v156_v42  ;;  %v629_v47 = vpop.f32.mrb[1].mxu0 }
 0x15c   :  { %v993_v48 = vadd.f32 %v629_v47, %v160_v44  ;;  %v631_v49 = vpop.f32.mrb[2].mxu0 }
 0x15d   :  { %v714_v51 = vsub.f32 0.0, %v992_v46  ;;  %v632_v52 = vpop.f32.mrb[3].mxu0 }
 0x15e   :  { %v715_v53 = vsub.f32 0.0, %v993_v48 }
 0x15f   :  { %v717_v54 = vmul.f32 1.442695, %v714_v51 }
 0x160   :  { %v719_v55 = vmul.f32 1.442695, %v715_v53 }
 0x161   :  { %1108 = vpow2.f32 %v717_v54 }
 0x162   :  { %1110 = vpow2.f32 %v719_v55 }
 0x163   :  { %1112 = vpow2.f32 %v721_v56 }
 0x16b   :  { %v1109_v57 = vpop.eup %1108 }
 0x16c   :  { %v1111_v58 = vpop.eup %1110  ;;  %v723_v59 = vadd.f32 1.0, %v1109_v57 }
 0x16d   :  { %v724_v60 = vadd.f32 1.0, %v1111_v58  ;;  %v1113_v61 = vpop.eup %1112 }
 0x16e   :  { %1114 = vrcp.f32 %v723_v59  ;;  %v725_v62 = vadd.f32 1.0, %v1113_v61 }
 0x16f   :  { %1116 = vrcp.f32 %v724_v60 }
 0x170   :  { %1118 = vrcp.f32 %v725_v62 }
 0x178   :  { %v1115_v63 = vpop.eup %1114 }
 0x179   :  { %v1117_v0 = vpop.eup %1116  ;;  %v730_v2 = vpack.c.bf16 %v1115_v63, %v1115_v63 }
 0x17a   :  { %v731_v1 = vpack.c.bf16 %v1117_v0, %v1117_v0  ;;  %v1119_v3 = vpop.eup %1118 }
 0x17b   :  { %v732_v4 = vpack.c.bf16 %v1119_v3, %v1119_v3 }
 0x17c   :  { %762 = vmatprep.subr.bf16.mxu1 %v731_v1 }
 0x17d   :  { %763 = vmatpush1.bf16.xpose.msra.mxu1 %v730_v2 }
 0x17e   :  { %986 = vmatprep.subr.bf16.mxu1 %v1196_v43 }
 0x184   :  { %795 = vmatmul.mubr.bf16.vlgmr.msra.gmra.mrb[8].mxu1 %v750_v25 }
 0x185   :  { %987 = vmatpush3.bf16.xpose.msra.mxu1 %v732_v4  ;;  %988 = vmatprep.mubr.msk.bf16.mxu1 %vm1197_vm0, %v1196_v43 }
 0x190   :  { %989 = vmatmul.mubr.bf16.vlgmr.msra.gmra.mrb[8].mxu1 %v758_v5 }
 0x263   :  { %v836_v7 = vpop.f32.mrb[8].mxu1 }
 0x264   :  { %v994_v8 = vadd.f32 %v836_v7, %v734_v6  ;;  %v990_v9 = vpop.f32.mrb[9].mxu1 }
 0x265   :  { %v839_v10 = vpop.f32.mrb[10].mxu1 }
 0x266   :  { %v991_v11 = vpop.f32.mrb[11].mxu1  ;;  %843 = vst.msk [vmem:[#allocation8] sm:$0x1] %vm842_vm1, %v994_v8 }
 0x267   :  { %1175 = shalt.err (!%p1172_p6)
}
 0x268   :  { %s1176_s26 = scalar_lea.hbm %s1301_s5, 16 }
 0x269   :  { %p1177_p7 = scmp.ne.s32.totalorder %s1301_s5, %s1176_s26  ;;  %p1180_p8 = scmp.lt.u32.totalorder %s1176_s26, %s1301_s5 }
 0x26b   :  { %p1182_p9 = pnand %p1180_p8, %p1177_p7 }
 0x26d   :  { %1185 = shalt.err (!%p1182_p9)
}
 0x26e   :  { %853 = dma.vmem_to_hbm [thread:$0]  %s851_s22, 16, %s1301_s5, [#allocation5]  }
 0x26f   :  { %1190 = dma.done.wait [#allocation5], 16  }
 0x270   :  { %1191 = vsyncadd [#allocation5], 4294967280 }
 0x271   :  { %857 = vsyncpa [#allocation4], 1 }
 0x272   :  { %858 = vsyncpa [#allocation7], 1 }
 0x273   :  { %859 = vsyncpa [#allocation5], 1 }

</bundles_post_ra>
